<compile_context>
chip_gen: v5e
topology: v5e:2x2
jax: 0.10.0
libtpu: 0.0.40
codegen_flags: <defaults>
</compile_context>

<pallas_src>
import functools

import jax
import jax.numpy as jnp
from jax.experimental import pallas as pl
from jax.experimental.pallas import tpu as pltpu


# ----------------------------------------------------------------------------
# Helpers
# ----------------------------------------------------------------------------
def _round_up(n, m):
    return ((n + m - 1) // m) * m


def _vmem_budget_bytes():
    """~75% of per-core physical VMEM (leave compiler headroom), capped at 96 MiB."""
    try:
        phys = int(pltpu.get_tpu_info().vmem_capacity_bytes)
    except Exception:
        phys = 64 * 1024 * 1024  # conservative fallback: v7x per-TensorCore VMEM
    return min((phys * 3) // 4, 96 * 1024 * 1024)


def _pick_hw_tile(b_tile, cin, chid, cout, x_itemsize, hw_pad, vmem_budget):
    """Largest multiple-of-128 tile of H*W that divides hw_pad and fits VMEM."""
    # Single-copy constants (weights/biases resident in VMEM) + scratch + output.
    fixed = (cin * chid + chid * cout + chid + cout) * 4   # f32 params
    fixed += b_tile * cin * 128 * 4                        # f32 partial-sum accumulator
    fixed += 2 * b_tile * cout * 4                         # output block (double-buffered)
    per_lane = 2 * b_tile * cin * x_itemsize               # input bytes per H*W element (2x bufs)
    avail = max(vmem_budget - fixed, 0)
    max_tile = (avail // per_lane) // 128 * 128
    max_tile = max(128, min(max_tile, 2048, hw_pad))
    t = max_tile
    while t > 128 and hw_pad % t != 0:
        t -= 128
    return t


# ----------------------------------------------------------------------------
# Fused kernel: streamed global-avg-pool -> mlp1 -> ReLU -> mlp2
# ----------------------------------------------------------------------------
def _roi_head_kernel(x_ref, w1_ref, b1_ref, w2_ref, b2_ref, o_ref, acc_ref,
                     *, lane_blocks):
    # x_ref  : (b_tile, Cin, hw_tile)  native dtype, H*W on lanes, Cin on sublanes
    # w1_ref : (Cin, Chid) f32         mlp1 weight (in, out) with 1/(H*W) folded in
    # b1_ref : (1, Chid)   f32
    # w2_ref : (Chid, Cout) f32        mlp2 weight (in, out)
    # b2_ref : (1, Cout)   f32
    # o_ref  : (b_tile, Cout)
    # acc_ref: (b_tile, Cin, 128) f32  per-lane-block partial spatial sums
    t = pl.program_id(1)

    @pl.when(t == 0)
    def _init():
        acc_ref[...] = jnp.zeros_like(acc_ref)

    # Partial spatial sum for this tile: pure VPU adds of aligned 128-lane blocks
    # (no reshape / no cross-lane reduce in the hot loop; DMA stays the limiter).
    s = x_ref[:, :, pl.ds(0, 128)].astype(jnp.float32)
    for j in range(1, lane_blocks):
        s = s + x_ref[:, :, pl.ds(j * 128, 128)].astype(jnp.float32)
    acc_ref[...] += s

    @pl.when(t == pl.num_programs(1) - 1)
    def _finalize():
        # Single cross-lane reduce; 1/(H*W) is already folded into w1.
        pooled = jnp.sum(acc_ref[...], axis=-1)            # (b_tile, Cin)
        h = jnp.dot(pooled, w1_ref[...],
                    preferred_element_type=jnp.float32) + b1_ref[...]
        h = jnp.maximum(h, 0.0)                             # ReLU
        y = jnp.dot(h, w2_ref[...],
                    preferred_element_type=jnp.float32) + b2_ref[...]
        o_ref[...] = y.astype(o_ref.dtype)


def roi_head_forward(x_nchw, params, boxmask=None):
    """RoIHead.forward. Input NCHW (like PyTorch); returns (B, out_channels)."""
    del boxmask  # accepted but unused by the reference forward
    w1, b1, w2, b2 = params              # w1: (Cin, Chid), w2: (Chid, Cout)
    B, cin, H, W = x_nchw.shape
    hw = H * W
    chid = w1.shape[1]
    cout = w2.shape[1]

    # Consume NCHW directly in its native dtype: free reshape of the contiguous
    # trailing dims (no transpose, no cast -> single HBM read of x).
    x = x_nchw.reshape(B, cin, hw)

    # Fold the 1/(H*W) mean scale into mlp1's weight (tiny param-side op).
    w1s = w1.astype(jnp.float32) * jnp.float32(1.0 / hw)
    b1v = b1.reshape(1, chid).astype(jnp.float32)
    w2f = w2.astype(jnp.float32)
    b2v = b2.reshape(1, cout).astype(jnp.float32)

    # Zero-pad H*W to a multiple of 128 only when needed (zeros don't change the sum).
    hw_pad = _round_up(hw, 128)
    if hw_pad != hw:
        x = jnp.pad(x, ((0, 0), (0, 0), (0, hw_pad - hw)))

    # Batch-parallel leading grid axis (used by v7x's second TensorCore when
    # B % 8 == 0; otherwise a single full-batch block).
    b_tile = 8 if B % 8 == 0 else B

    vmem_budget = _vmem_budget_bytes()
    hw_tile = _pick_hw_tile(b_tile, cin, chid, cout,
                            jnp.dtype(x.dtype).itemsize, hw_pad, vmem_budget)
    grid = (B // b_tile, hw_pad // hw_tile)

    kernel = functools.partial(_roi_head_kernel, lane_blocks=hw_tile // 128)

    return pl.pallas_call(
        kernel,
        out_shape=jax.ShapeDtypeStruct((B, cout), jnp.float32),
        grid_spec=pltpu.PrefetchScalarGridSpec(
            num_scalar_prefetch=0,
            grid=grid,
            in_specs=[
                pl.BlockSpec((b_tile, cin, hw_tile), lambda b, t: (b, 0, t)),
                # Constants: whole-array VMEM residents (no double buffering).
                pl.BlockSpec(memory_space=pltpu.MemorySpace.VMEM),  # w1 (scaled)
                pl.BlockSpec(memory_space=pltpu.MemorySpace.VMEM),  # b1
                pl.BlockSpec(memory_space=pltpu.MemorySpace.VMEM),  # w2
                pl.BlockSpec(memory_space=pltpu.MemorySpace.VMEM),  # b2
            ],
            out_specs=pl.BlockSpec((b_tile, cout), lambda b, t: (b, 0)),
            scratch_shapes=[pltpu.VMEM((b_tile, cin, 128), jnp.float32)],
        ),
        compiler_params=pltpu.CompilerParams(
            # batch blocks are independent; the hw axis is the reduction.
            dimension_semantics=("parallel", "arbitrary"),
            vmem_limit_bytes=int(vmem_budget),
        ),
    )(x, w1s, b1v, w2f, b2v)


# ----------------------------------------------------------------------------
# Parameter construction (PyTorch nn.Linear init, stored transposed as (in, out))
# ----------------------------------------------------------------------------
def make_roi_head_params(key, in_channels, out_channels):
    k1, k2, k3, k4 = jax.random.split(key, 4)
    lim1 = 1.0 / float(jnp.sqrt(in_channels))
    w1 = jax.random.uniform(k1, (in_channels, out_channels), jnp.float32, -lim1, lim1)
    b1 = jax.random.uniform(k2, (out_channels,), jnp.float32, -lim1, lim1)
    lim2 = 1.0 / float(jnp.sqrt(out_channels))
    w2 = jax.random.uniform(k3, (out_channels, out_channels), jnp.float32, -lim2, lim2)
    b2 = jax.random.uniform(k4, (out_channels,), jnp.float32, -lim2, lim2)
    return w1, b1, w2, b2


if __name__ == "__main__":
    # Small synthetic config (module default in_channels=2048; shrunk here,
    # out_channels chosen lane-dense = 128 = cfg.model.mask_head_out_channel).
    B, IN_CH, H, W = 2, 256, 16, 16
    OUT_CH = 128

    key = jax.random.PRNGKey(0)
    key, kx = jax.random.split(key)
    x = jax.random.normal(kx, (B, IN_CH, H, W), jnp.float32)

    params = make_roi_head_params(key, IN_CH, OUT_CH)

    out = roi_head_forward(x, params)
    out = jax.block_until_ready(out)

    # Pure-JAX reference (same math as the PyTorch module).
    w1, b1, w2, b2 = params
    pooled = x.mean(axis=(2, 3))
    hidden = jnp.maximum(
        jnp.dot(pooled, w1, precision=jax.lax.Precision.HIGHEST) + b1, 0.0)
    ref = jnp.dot(hidden, w2, precision=jax.lax.Precision.HIGHEST) + b2

    assert out.shape == (B, OUT_CH), (out.shape, (B, OUT_CH))
    assert bool(jnp.all(jnp.isfinite(out)))
    max_err = float(jnp.max(jnp.abs(out - ref)))
    assert jnp.allclose(out, ref, atol=2e-3, rtol=2e-3), max_err
    print("KERNEL_OK")
</pallas_src>

<mosaic_0001>
module attributes {stable_mosaic.version = 11 : i64} {
  func.func @_roi_head_kernel(%arg0: i32, %arg1: i32, %arg2: memref<2x256x256xf32, #tpu.memory_space<vmem>>, %arg3: memref<256x128xf32, #tpu.memory_space<vmem>>, %arg4: memref<1x128xf32, #tpu.memory_space<vmem>>, %arg5: memref<128x128xf32, #tpu.memory_space<vmem>>, %arg6: memref<1x128xf32, #tpu.memory_space<vmem>>, %arg7: memref<2x128xf32, #tpu.memory_space<vmem>>, %arg8: memref<2x256x128xf32, #tpu.memory_space<vmem>>) attributes {dimension_semantics = [#tpu.dimension_semantics<parallel>, #tpu.dimension_semantics<arbitrary>], iteration_bounds = array<i64: 1, 1>, scalar_prefetch = 0 : i64, scratch_operands = 1 : i64, tpu.core_type = #tpu.core_type<tc>, window_params = [{transform_indices = @transform_0, window_bounds = array<i64: 2, 256, 256>}, {pipeline_mode = #tpu.pipeline_mode<synchronous>, transform_indices = @transform_1, window_bounds = array<i64: 256, 128>}, {pipeline_mode = #tpu.pipeline_mode<synchronous>, transform_indices = @transform_2, window_bounds = array<i64: 1, 128>}, {pipeline_mode = #tpu.pipeline_mode<synchronous>, transform_indices = @transform_3, window_bounds = array<i64: 128, 128>}, {pipeline_mode = #tpu.pipeline_mode<synchronous>, transform_indices = @transform_4, window_bounds = array<i64: 1, 128>}, {transform_indices = @transform_5, window_bounds = array<i64: 2, 128>}]} {
    %c0_i32 = arith.constant 0 : i32
    %0 = arith.cmpi eq, %arg1, %c0_i32 : i32
    %1 = arith.extui %0 : i1 to i32
    %c0_i32_0 = arith.constant 0 : i32
    %2 = arith.cmpi ne, %1, %c0_i32_0 : i32
    scf.if %2 {
      %cst = arith.constant 0.000000e+00 : f32
      %12 = vector.broadcast %cst : f32 to vector<2x256x128xf32>
      %c0_13 = arith.constant 0 : index
      %c0_14 = arith.constant 0 : index
      %c0_15 = arith.constant 0 : index
      %13 = vector.load %arg8[%c0_13, %c0_14, %c0_15] : memref<2x256x128xf32, #tpu.memory_space<vmem>>, vector<2x256x128xf32>
      tpu.vector_store %arg8[%c0_13, %c0_14, %c0_15], %12 {strides = array<i32>} : memref<2x256x128xf32, #tpu.memory_space<vmem>>, vector<2x256x128xf32>,
    } else {
    }
    %c0 = arith.constant 0 : index
    %c0_1 = arith.constant 0 : index
    %c0_2 = arith.constant 0 : index
    %3 = vector.load %arg2[%c0, %c0_1, %c0_2] : memref<2x256x256xf32, #tpu.memory_space<vmem>>, vector<2x256x128xf32>
    %c0_3 = arith.constant 0 : index
    %c0_4 = arith.constant 0 : index
    %c128 = arith.constant 128 : index
    %4 = vector.load %arg2[%c0_3, %c0_4, %c128] : memref<2x256x256xf32, #tpu.memory_space<vmem>>, vector<2x256x128xf32>
    %5 = arith.addf %3, %4 : vector<2x256x128xf32>
    %c0_5 = arith.constant 0 : index
    %c0_6 = arith.constant 0 : index
    %c0_7 = arith.constant 0 : index
    %6 = vector.load %arg8[%c0_5, %c0_6, %c0_7] : memref<2x256x128xf32, #tpu.memory_space<vmem>>, vector<2x256x128xf32>
    %7 = arith.addf %6, %5 : vector<2x256x128xf32>
    %c0_8 = arith.constant 0 : index
    %c0_9 = arith.constant 0 : index
    %c0_10 = arith.constant 0 : index
    %8 = vector.load %arg8[%c0_8, %c0_9, %c0_10] : memref<2x256x128xf32, #tpu.memory_space<vmem>>, vector<2x256x128xf32>
    tpu.vector_store %arg8[%c0_8, %c0_9, %c0_10], %7 {strides = array<i32>} : memref<2x256x128xf32, #tpu.memory_space<vmem>>, vector<2x256x128xf32>,
    %c0_i32_11 = arith.constant 0 : i32
    %9 = arith.cmpi eq, %arg1, %c0_i32_11 : i32
    %10 = arith.extui %9 : i1 to i32
    %c0_i32_12 = arith.constant 0 : i32
    %11 = arith.cmpi ne, %10, %c0_i32_12 : i32
    scf.if %11 {
      %c0_13 = arith.constant 0 : index
      %c0_14 = arith.constant 0 : index
      %c0_15 = arith.constant 0 : index
      %12 = vector.load %arg8[%c0_13, %c0_14, %c0_15] : memref<2x256x128xf32, #tpu.memory_space<vmem>>, vector<2x256x128xf32>
      %cst = arith.constant dense<0.000000e+00> : vector<2x256xf32>
      %13 = vector.multi_reduction <add>, %12, %cst [2] : vector<2x256x128xf32> to vector<2x256xf32>
      %c0_16 = arith.constant 0 : index
      %c0_17 = arith.constant 0 : index
      %14 = vector.load %arg3[%c0_16, %c0_17] : memref<256x128xf32, #tpu.memory_space<vmem>>, vector<256x128xf32>
      %cst_18 = arith.constant dense<0.000000e+00> : vector<2x128xf32>
      %15 = tpu.matmul %13, %14, %cst_18 {dimension_numbers = #tpu.dot_dimension_numbers<[1], [0], [0], [1], [0, 0, 1, 1], [], []>} : vector<2x256xf32>, vector<256x128xf32>, vector<2x128xf32> -> vector<2x128xf32>
      %c0_19 = arith.constant 0 : index
      %c0_20 = arith.constant 0 : index
      %16 = vector.load %arg4[%c0_19, %c0_20] : memref<1x128xf32, #tpu.memory_space<vmem>>, vector<1x128xf32>
      %17 = vector.broadcast %16 : vector<1x128xf32> to vector<2x128xf32>
      %18 = arith.addf %15, %17 : vector<2x128xf32>
      %cst_21 = arith.constant 0.000000e+00 : f32
      %19 = vector.broadcast %cst_21 : f32 to vector<2x128xf32>
      %20 = arith.maximumf %18, %19 : vector<2x128xf32>
      %c0_22 = arith.constant 0 : index
      %c0_23 = arith.constant 0 : index
      %21 = vector.load %arg5[%c0_22, %c0_23] : memref<128x128xf32, #tpu.memory_space<vmem>>, vector<128x128xf32>
      %cst_24 = arith.constant dense<0.000000e+00> : vector<2x128xf32>
      %22 = tpu.matmul %20, %21, %cst_24 {dimension_numbers = #tpu.dot_dimension_numbers<[1], [0], [0], [1], [0, 0, 1, 1], [], []>} : vector<2x128xf32>, vector<128x128xf32>, vector<2x128xf32> -> vector<2x128xf32>
      %c0_25 = arith.constant 0 : index
      %c0_26 = arith.constant 0 : index
      %23 = vector.load %arg6[%c0_25, %c0_26] : memref<1x128xf32, #tpu.memory_space<vmem>>, vector<1x128xf32>
      %24 = vector.broadcast %23 : vector<1x128xf32> to vector<2x128xf32>
      %25 = arith.addf %22, %24 : vector<2x128xf32>
      %c0_27 = arith.constant 0 : index
      %c0_28 = arith.constant 0 : index
      %26 = vector.load %arg7[%c0_27, %c0_28] : memref<2x128xf32, #tpu.memory_space<vmem>>, vector<2x128xf32>
      tpu.vector_store %arg7[%c0_27, %c0_28], %25 {strides = array<i32>} : memref<2x128xf32, #tpu.memory_space<vmem>>, vector<2x128xf32>,
    } else {
    }
    return
  }
  func.func @transform_0(%arg0: i32, %arg1: i32) -> (i32, i32, i32) {
    %c0_i32 = arith.constant 0 : i32
    %c0_i32_0 = arith.constant 0 : i32
    return %arg0, %c0_i32, %arg1 : i32, i32, i32
  }
  func.func @transform_1(%arg0: i32, %arg1: i32) -> (i32, i32) {
    %c0_i32 = arith.constant 0 : i32
    %c0_i32_0 = arith.constant 0 : i32
    %c0_i32_1 = arith.constant 0 : i32
    return %c0_i32, %c0_i32_0 : i32, i32
  }
  func.func @transform_2(%arg0: i32, %arg1: i32) -> (i32, i32) {
    %c0_i32 = arith.constant 0 : i32
    %c0_i32_0 = arith.constant 0 : i32
    %c0_i32_1 = arith.constant 0 : i32
    return %c0_i32, %c0_i32_0 : i32, i32
  }
  func.func @transform_3(%arg0: i32, %arg1: i32) -> (i32, i32) {
    %c0_i32 = arith.constant 0 : i32
    %c0_i32_0 = arith.constant 0 : i32
    %c0_i32_1 = arith.constant 0 : i32
    return %c0_i32, %c0_i32_0 : i32, i32
  }
  func.func @transform_4(%arg0: i32, %arg1: i32) -> (i32, i32) {
    %c0_i32 = arith.constant 0 : i32
    %c0_i32_0 = arith.constant 0 : i32
    %c0_i32_1 = arith.constant 0 : i32
    return %c0_i32, %c0_i32_0 : i32, i32
  }
  func.func @transform_5(%arg0: i32, %arg1: i32) -> (i32, i32) {
    %c0_i32 = arith.constant 0 : i32
    %c0_i32_0 = arith.constant 0 : i32
    return %arg0, %c0_i32 : i32, i32
  }
}

</mosaic_0001>

<bundles_post_ra>
// kernel: tpu_custom_call.1
= control target key start
LH: loop header
LB: loop body
LE: loop exit
PB: predicated region body
PF: predicated region fallthrough
CT: control target
= control target key end

     0   :  { %10 = vsyncpa [#allocation4], 0  ;;  %s1477_s0 = inlined_call_operand.hbm [shape: f32[2,256,256], index: 0, kind: input, shape index: {}]   ;;  %s1478_s1 = inlined_call_operand.hbm [shape: f32[256,128], index: 1, kind: input, shape index: {}]   ;;  %s1479_s2 = inlined_call_operand.vmem [shape: f32[1,128], index: 2, kind: input, shape index: {}]   ;;  %s1480_s3 = inlined_call_operand.hbm [shape: f32[128,128], index: 3, kind: input, shape index: {}]   ;;  %s1481_s4 = inlined_call_operand.vmem [shape: f32[1,128], index: 4, kind: input, shape index: {}]   ;;  %s1482_s5 = inlined_call_operand.hbm [shape: f32[2,128], index: 5, kind: output, shape index: {}]  }
   0x1   :  { %11 = vsyncpa [#allocation7], 0  ;;  %s30_s20 = sshll.u32 %s1478_s1, 4  ;;  %s31_s20 = int_to_ptr.hbm [resolvable:$true] %s30_s20 }
   0x2   :  { %12 = vsyncpa [#allocation5], 0  ;;  %s1188_s21 = smov [#allocation6]   ;;  %s17_s25 = sshll.u32 %s1477_s0, 4  ;;  %s18_s25 = int_to_ptr.hbm [resolvable:$true] %s17_s25 }
   0x3   :  { %s32_s22 = sshll.u32 %s1188_s21, 4  ;;  %s1189_s26 = smov 128   ;;  %s33_s22 = int_to_ptr.vmem [resolvable:$true] %s32_s22 }
   0x4   :  { %s1190_s27 = smov 8   ;;  %s1191_s28 = smov [#allocation3]  }
   0x5   :  { %38 = dma.hbm_to_vmem [thread:$0]  %s31_s20, 4096, %s33_s22, [#allocation7], %s1189_s26, %s1189_s26, %s1190_s27  }
   0x6   :  { %s19_s29 = sshll.u32 %s1191_s28, 4  ;;  %s1192_s30 = smov 256   ;;  %s20_s29 = int_to_ptr.vmem [resolvable:$true] %s19_s29 }
   0x7   :  { %s1193_s6 = smov 16   ;;  %s45_s8 = sshll.u32 %s1480_s3, 4  ;;  %s46_s8 = int_to_ptr.hbm [resolvable:$true] %s45_s8 }
   0x8   :  { %25 = dma.hbm_to_vmem [thread:$0]  %s18_s25, 16384, %s20_s29, [#allocation4], %s1192_s30, %s1192_s30, %s1193_s6  }
   0x9   :  { %s1194_s9 = smov [#allocation8]  }
   0xa   :  { %s47_s10 = sshll.u32 %s1194_s9, 4  ;;  %s48_s10 = int_to_ptr.vmem [resolvable:$true] %s47_s10 }
   0xb   :  { %53 = dma.hbm_to_vmem [thread:$0]  %s46_s8, 2048, %s48_s10, [#allocation7], %s1189_s26, %s1189_s26, %s1190_s27  }
   0xc   :  { %1182 = dma.done.wait [#allocation4], 16384  }
   0xd   :  { %1183 = vsyncadd [#allocation4], 4294950912 }
   0xe   :  { %1184 = dma.done.wait [#allocation7], 6144  }
   0xf   :  { %1185 = vsyncadd [#allocation7], 4294961152  ;;  %v168_v0 = vld [vmem:[#allocation3 + $0x200] sm:$0xff]  ;;  %v232_v1 = vld [vmem:[#allocation3 + $0x208] sm:$0xff]  ;;  %vm820_vm0 = vcmask 130112   ;;  %vm824_vm1 = vcmask 195712  }
  0x10   :  { %v138_v2 = vld [vmem:[#allocation3 + $0x20] sm:$0xff]  ;;  %v296_v3 = vadd.f32 %v232_v1, %v168_v0  ;;  %v202_v4 = vld [vmem:[#allocation3 + $0x28] sm:$0xff]  ;;  %v169_v9 = vld [vmem:[#allocation3 + $0x210] sm:$0xff]  ;;  %vm828_vm2 = vcmask 261312   ;;  %vm832_vm3 = vcmask 326912   ;;  %vm836_vm4 = vcmask 392512  }
  0x11   :  { %v136_v5 = vld [vmem:[#allocation3] sm:$0xff]  ;;  %v200_v6 = vld [vmem:[#allocation3 + $0x8] sm:$0xff]  ;;  %v266_v7 = vadd.f32 %v202_v4, %v138_v2  ;;  %v233_v10 = vld [vmem:[#allocation3 + $0x218] sm:$0xff]  ;;  %vm840_vm5 = vcmask 458112   ;;  %vm844_vm6 = vcmask 523712   ;;  %vm848_vm7 = vcmask 589312  }
  0x12   :  { %v264_v8 = vadd.f32 %v200_v6, %v136_v5  ;;  %651 = vadd.xlane.f32.xlu1 %v296_v3  ;;  %v170_v11 = vld [vmem:[#allocation3 + $0x220] sm:$0xff]  ;;  %v234_v12 = vld [vmem:[#allocation3 + $0x228] sm:$0xff]  ;;  %v137_v13 = vld [vmem:[#allocation3 + $0x10] sm:$0xff]  ;;  %v297_v15 = vadd.f32 %v233_v10, %v169_v9  ;;  %vm852_vm8 = vcmask 654912   ;;  %vm856_vm9 = vcmask 720512   ;;  %s1195_s13 = smov [#allocation9]  }
  0x13   :  { %591 = vadd.xlane.f32.xlu2 %v266_v7  ;;  %v201_v14 = vld [vmem:[#allocation3 + $0x18] sm:$0xff]  ;;  %v298_v16 = vadd.f32 %v234_v12, %v170_v11  ;;  %v152_v18 = vld [vmem:[#allocation3 + $0x100] sm:$0xff]  ;;  %v216_v19 = vld [vmem:[#allocation3 + $0x108] sm:$0xff]  ;;  %vm860_vm10 = vcmask 786112   ;;  %vm864_vm11 = vcmask 851712   ;;  %vm868_vm12 = vcmask 917312  }
  0x14   :  { %587 = vadd.xlane.f32.xlu0 %v264_v8  ;;  %v265_v17 = vadd.f32 %v201_v14, %v137_v13  ;;  %v153_v20 = vld [vmem:[#allocation3 + $0x110] sm:$0xff]  ;;  %v217_v21 = vld [vmem:[#allocation3 + $0x118] sm:$0xff]  ;;  %v280_v24 = vadd.f32 %v216_v19, %v152_v18  ;;  %v184_v27 = vld [vmem:[#allocation3 + $0x300] sm:$0xff]  ;;  %vm872_vm13 = vcmask 982912   ;;  %vm876_vm14 = vcmask 1048512   ;;  %s1063_s14 = sshll.u32 %s1195_s13, 4  ;;  %s1064_s14 = int_to_ptr.vmem [resolvable:$true] %s1063_s14 }
  0x15   :  { %v139_v22 = vld [vmem:[#allocation3 + $0x30] sm:$0xff]  ;;  %v203_v23 = vld [vmem:[#allocation3 + $0x38] sm:$0xff]  ;;  %v281_v25 = vadd.f32 %v217_v21, %v153_v20  ;;  %v248_v28 = vld [vmem:[#allocation3 + $0x308] sm:$0xff]  ;;  %vm971_vm15 = vcmask 1041409   ;;  %s1065_s17 = sshll.u32 %s1482_s5, 4  ;;  %s1066_s17 = int_to_ptr.hbm [resolvable:$true] %s1065_s17 }
  0x16   :  { %v267_v26 = vadd.f32 %v203_v23, %v139_v22  ;;  %v185_v29 = vld [vmem:[#allocation3 + $0x310] sm:$0xff]  ;;  %v249_v30 = vld [vmem:[#allocation3 + $0x318] sm:$0xff]  ;;  %v312_v33 = vadd.f32 %v248_v28, %v184_v27  ;;  %v154_v36 = vld [vmem:[#allocation3 + $0x120] sm:$0xff] }
  0x17   :  { %v171_v31 = vld [vmem:[#allocation3 + $0x230] sm:$0xff]  ;;  %v235_v32 = vld [vmem:[#allocation3 + $0x238] sm:$0xff]  ;;  %v313_v34 = vadd.f32 %v249_v30, %v185_v29  ;;  %v218_v37 = vld [vmem:[#allocation3 + $0x128] sm:$0xff] }
  0x18   :  { %v299_v35 = vadd.f32 %v235_v32, %v171_v31  ;;  %v172_v38 = vld [vmem:[#allocation3 + $0x240] sm:$0xff]  ;;  %v236_v39 = vld [vmem:[#allocation3 + $0x248] sm:$0xff]  ;;  %v282_v42 = vadd.f32 %v218_v37, %v154_v36  ;;  %v141_v45 = vld [vmem:[#allocation3 + $0x50] sm:$0xff] }
  0x19   :  { %v140_v40 = vld [vmem:[#allocation3 + $0x40] sm:$0xff]  ;;  %v204_v41 = vld [vmem:[#allocation3 + $0x48] sm:$0xff]  ;;  %v300_v43 = vadd.f32 %v236_v39, %v172_v38  ;;  %v205_v46 = vld [vmem:[#allocation3 + $0x58] sm:$0xff] }
  0x1a   :  { %653 = vadd.xlane.f32.xlu1 %v297_v15  ;;  %v268_v44 = vadd.f32 %v204_v41, %v140_v40  ;;  %v155_v47 = vld [vmem:[#allocation3 + $0x130] sm:$0xff]  ;;  %v219_v48 = vld [vmem:[#allocation3 + $0x138] sm:$0xff]  ;;  %v186_v49 = vld [vmem:[#allocation3 + $0x320] sm:$0xff]  ;;  %v269_v51 = vadd.f32 %v205_v46, %v141_v45 }
  0x1b   :  { %655 = vadd.xlane.f32.xlu2 %v298_v16  ;;  %v250_v50 = vld [vmem:[#allocation3 + $0x328] sm:$0xff]  ;;  %v283_v52 = vadd.f32 %v219_v48, %v155_v47  ;;  %v187_v54 = vld [vmem:[#allocation3 + $0x330] sm:$0xff]  ;;  %v251_v55 = vld [vmem:[#allocation3 + $0x338] sm:$0xff] }
  0x1c   :  { %589 = vadd.xlane.f32.xlu0 %v265_v17  ;;  %v314_v53 = vadd.f32 %v250_v50, %v186_v49  ;;  %v142_v56 = vld [vmem:[#allocation3 + $0x60] sm:$0xff]  ;;  %v206_v57 = vld [vmem:[#allocation3 + $0x68] sm:$0xff]  ;;  %v173_v58 = vld [vmem:[#allocation3 + $0x250] sm:$0xff]  ;;  %v315_v60 = vadd.f32 %v251_v55, %v187_v54 }
  0x1d   :  { %v237_v59 = vld [vmem:[#allocation3 + $0x258] sm:$0xff]  ;;  %v270_v61 = vadd.f32 %v206_v57, %v142_v56  ;;  %v174_v63 = vld [vmem:[#allocation3 + $0x260] sm:$0xff]  ;;  %v238_v0 = vld [vmem:[#allocation3 + $0x268] sm:$0xff] }
  0x1e   :  { %v301_v62 = vadd.f32 %v237_v59, %v173_v58  ;;  %v188_v1 = vld [vmem:[#allocation3 + $0x340] sm:$0xff]  ;;  %v252_v2 = vld [vmem:[#allocation3 + $0x348] sm:$0xff]  ;;  %v302_v5 = vadd.f32 %v238_v0, %v174_v63  ;;  %v157_v8 = vld [vmem:[#allocation3 + $0x150] sm:$0xff] }
  0x1f   :  { %v156_v3 = vld [vmem:[#allocation3 + $0x140] sm:$0xff]  ;;  %v220_v4 = vld [vmem:[#allocation3 + $0x148] sm:$0xff]  ;;  %v316_v6 = vadd.f32 %v252_v2, %v188_v1  ;;  %v221_v9 = vld [vmem:[#allocation3 + $0x158] sm:$0xff] }
  0x20   :  { %v284_v7 = vadd.f32 %v220_v4, %v156_v3  ;;  %v175_v10 = vld [vmem:[#allocation3 + $0x270] sm:$0xff]  ;;  %v239_v11 = vld [vmem:[#allocation3 + $0x278] sm:$0xff]  ;;  %v285_v14 = vadd.f32 %v221_v9, %v157_v8  ;;  %v144_v17 = vld [vmem:[#allocation3 + $0x80] sm:$0xff] }
  0x21   :  { %v143_v12 = vld [vmem:[#allocation3 + $0x70] sm:$0xff]  ;;  %v207_v13 = vld [vmem:[#allocation3 + $0x78] sm:$0xff]  ;;  %v303_v15 = vadd.f32 %v239_v11, %v175_v10  ;;  %v208_v18 = vld [vmem:[#allocation3 + $0x88] sm:$0xff]  ;;  %v815_v10 = vlaneseq }
  0x22   :  { %619 = vadd.xlane.f32.xlu1 %v280_v24  ;;  %v271_v16 = vadd.f32 %v207_v13, %v143_v12  ;;  %v158_v19 = vld [vmem:[#allocation3 + $0x160] sm:$0xff]  ;;  %v222_v20 = vld [vmem:[#allocation3 + $0x168] sm:$0xff]  ;;  %v189_v21 = vld [vmem:[#allocation3 + $0x350] sm:$0xff]  ;;  %v272_v23 = vadd.f32 %v208_v18, %v144_v17 }
  0x23   :  { %621 = vadd.xlane.f32.xlu2 %v281_v25  ;;  %v253_v22 = vld [vmem:[#allocation3 + $0x358] sm:$0xff]  ;;  %v286_v24 = vadd.f32 %v222_v20, %v158_v19  ;;  %v254_v27 = vld [vmem:[#allocation3 + $0x368] sm:$0xff]  ;;  %v145_v28 = vld [vmem:[#allocation3 + $0x90] sm:$0xff]  ;;  %v1235_v20 = vand.u32 127, %v815_v10 }
  0x24   :  { %593 = vadd.xlane.f32.xlu0 %v267_v26  ;;  %v317_v25 = vadd.f32 %v253_v22, %v189_v21  ;;  %v190_v26 = vld [vmem:[#allocation3 + $0x360] sm:$0xff]  ;;  %v209_v29 = vld [vmem:[#allocation3 + $0x98] sm:$0xff]  ;;  %v240_v31 = vld [vmem:[#allocation3 + $0x288] sm:$0xff] }
  0x25   :  { %v176_v30 = vld [vmem:[#allocation3 + $0x280] sm:$0xff]  ;;  %v318_v32 = vadd.f32 %v254_v27, %v190_v26  ;;  %v241_v36 = vld [vmem:[#allocation3 + $0x298] sm:$0xff]  ;;  %v191_v37 = vld [vmem:[#allocation3 + $0x370] sm:$0xff]  ;;  %v1238_v21 = vadd.s32 4294967280, %v1235_v20  ;;  %v1241_v22 = vadd.s32 4294967288, %v1235_v20 }
  0x26   :  { %v255_v38 = vld [vmem:[#allocation3 + $0x378] sm:$0xff]  ;;  %v159_v39 = vld [vmem:[#allocation3 + $0x170] sm:$0xff]  ;;  %v224_v45 = vld [vmem:[#allocation3 + $0x188] sm:$0xff] }
  0x27   :  { %v223_v40 = vld [vmem:[#allocation3 + $0x178] sm:$0xff]  ;;  %v178_v46 = vld [vmem:[#allocation3 + $0x2a0] sm:$0xff]  ;;  %v242_v47 = vld [vmem:[#allocation3 + $0x2a8] sm:$0xff] }
  0x28   :  { %v146_v48 = vld [vmem:[#allocation3 + $0xa0] sm:$0xff]  ;;  %v210_v49 = vld [vmem:[#allocation3 + $0xa8] sm:$0xff]  ;;  %v211_v54 = vld [vmem:[#allocation3 + $0xb8] sm:$0xff] }
  0x29   :  { %v161_v55 = vld [vmem:[#allocation3 + $0x190] sm:$0xff]  ;;  %v225_v56 = vld [vmem:[#allocation3 + $0x198] sm:$0xff]  ;;  %v192_v57 = vld [vmem:[#allocation3 + $0x380] sm:$0xff] }
  0x2a   :  { %683 = vadd.xlane.f32.xlu1 %v312_v33  ;;  %v273_v33 = vadd.f32 %v209_v29, %v145_v28  ;;  %v256_v58 = vld [vmem:[#allocation3 + $0x388] sm:$0xff]  ;;  %v257_v63 = vld [vmem:[#allocation3 + $0x398] sm:$0xff]  ;;  %v148_v0 = vld [vmem:[#allocation3 + $0xc0] sm:$0xff] }
  0x2b   :  { %685 = vadd.xlane.f32.xlu2 %v313_v34  ;;  %v304_v34 = vadd.f32 %v240_v31, %v176_v30  ;;  %v212_v1 = vld [vmem:[#allocation3 + $0xc8] sm:$0xff]  ;;  %v179_v2 = vld [vmem:[#allocation3 + $0x2b0] sm:$0xff]  ;;  %v243_v3 = vld [vmem:[#allocation3 + $0x2b8] sm:$0xff] }
  0x2c   :  { %657 = vadd.xlane.f32.xlu0 %v299_v35  ;;  %v177_v35 = vld [vmem:[#allocation3 + $0x290] sm:$0xff]  ;;  %v244_v8 = vld [vmem:[#allocation3 + $0x2c8] sm:$0xff]  ;;  %v194_v9 = vld [vmem:[#allocation3 + $0x3a0] sm:$0xff] }
  0x2d   :  { %v305_v41 = vadd.f32 %v241_v36, %v177_v35  ;;  %v258_v11 = vld [vmem:[#allocation3 + $0x3a8] sm:$0xff]  ;;  %v162_v12 = vld [vmem:[#allocation3 + $0x1a0] sm:$0xff]  ;;  %v245_v26 = vld [vmem:[#allocation3 + $0x2d8] sm:$0xff] }
  0x2e   :  { %v226_v13 = vld [vmem:[#allocation3 + $0x1a8] sm:$0xff]  ;;  %v322_v18 = vadd.f32 %v258_v11, %v194_v9  ;;  %v149_v28 = vld [vmem:[#allocation3 + $0xd0] sm:$0xff]  ;;  %v213_v29 = vld [vmem:[#allocation3 + $0xd8] sm:$0xff] }
  0x2f   :  { %v290_v19 = vadd.f32 %v226_v13, %v162_v12 }
  0x32   :  { %623 = vadd.xlane.f32.xlu1 %v282_v42  ;;  %v319_v42 = vadd.f32 %v255_v38, %v191_v37 }
  0x33   :  { %659 = vadd.xlane.f32.xlu2 %v300_v43  ;;  %v287_v43 = vadd.f32 %v223_v40, %v159_v39  ;;  %v277_v40 = vadd.f32 %v213_v29, %v149_v28 }
  0x34   :  { %595 = vadd.xlane.f32.xlu0 %v268_v44  ;;  %v160_v44 = vld [vmem:[#allocation3 + $0x180] sm:$0xff] }
  0x35   :  { %v288_v50 = vadd.f32 %v224_v45, %v160_v44  ;;  %v1254_v45 = vadd.s32 4294967272, %v1235_v20 }
  0x3a   :  { %597 = vadd.xlane.f32.xlu1 %v269_v51  ;;  %v306_v51 = vadd.f32 %v242_v47, %v178_v46  ;;  %v150_v46 = vld [vmem:[#allocation3 + $0xe0] sm:$0xff]  ;;  %v214_v47 = vld [vmem:[#allocation3 + $0xe8] sm:$0xff] }
  0x3b   :  { %625 = vadd.xlane.f32.xlu2 %v283_v52  ;;  %v274_v52 = vadd.f32 %v210_v49, %v146_v48  ;;  %v164_v48 = vld [vmem:[#allocation3 + $0x1c0] sm:$0xff]  ;;  %v228_v49 = vld [vmem:[#allocation3 + $0x1c8] sm:$0xff] }
  0x3c   :  { %687 = vadd.xlane.f32.xlu0 %v314_v53  ;;  %v147_v53 = vld [vmem:[#allocation3 + $0xb0] sm:$0xff] }
  0x3d   :  { %v275_v59 = vadd.f32 %v211_v54, %v147_v53 }
  0x42   :  { %689 = vadd.xlane.f32.xlu1 %v315_v60  ;;  %v289_v60 = vadd.f32 %v225_v56, %v161_v55  ;;  %v278_v56 = vadd.f32 %v214_v47, %v150_v46 }
  0x43   :  { %599 = vadd.xlane.f32.xlu2 %v270_v61  ;;  %v320_v61 = vadd.f32 %v256_v58, %v192_v57 }
  0x44   :  { %661 = vadd.xlane.f32.xlu0 %v301_v62  ;;  %v193_v62 = vld [vmem:[#allocation3 + $0x390] sm:$0xff] }
  0x45   :  { %v321_v4 = vadd.f32 %v257_v63, %v193_v62  ;;  %v196_v63 = vld [vmem:[#allocation3 + $0x3c0] sm:$0xff] }
  0x4a   :  { %663 = vadd.xlane.f32.xlu1 %v302_v5  ;;  %v276_v5 = vadd.f32 %v212_v1, %v148_v0  ;;  %v260_v0 = vld [vmem:[#allocation3 + $0x3c8] sm:$0xff]  ;;  %v151_v1 = vld [vmem:[#allocation3 + $0xf0] sm:$0xff] }
  0x4b   :  { %691 = vadd.xlane.f32.xlu2 %v316_v6  ;;  %v307_v6 = vadd.f32 %v243_v3, %v179_v2  ;;  %v215_v2 = vld [vmem:[#allocation3 + $0xf8] sm:$0xff]  ;;  %v182_v3 = vld [vmem:[#allocation3 + $0x2e0] sm:$0xff]  ;;  %v324_v9 = vadd.f32 %v260_v0, %v196_v63 }
  0x4c   :  { %627 = vadd.xlane.f32.xlu0 %v284_v7  ;;  %v180_v7 = vld [vmem:[#allocation3 + $0x2c0] sm:$0xff]  ;;  %v279_v12 = vadd.f32 %v215_v2, %v151_v1 }
  0x4d   :  { %v308_v17 = vadd.f32 %v244_v8, %v180_v7 }
  0x52   :  { %629 = vadd.xlane.f32.xlu1 %v285_v14 }
  0x53   :  { %665 = vadd.xlane.f32.xlu2 %v303_v15 }
  0x54   :  { %601 = vadd.xlane.f32.xlu0 %v271_v16 }
  0x5a   :  { %603 = vadd.xlane.f32.xlu1 %v272_v23  ;;  %v163_v23 = vld [vmem:[#allocation3 + $0x1b0] sm:$0xff] }
  0x5b   :  { %631 = vadd.xlane.f32.xlu2 %v286_v24  ;;  %v227_v24 = vld [vmem:[#allocation3 + $0x1b8] sm:$0xff] }
  0x5c   :  { %693 = vadd.xlane.f32.xlu0 %v317_v25  ;;  %v181_v25 = vld [vmem:[#allocation3 + $0x2d0] sm:$0xff]  ;;  %v291_v35 = vadd.f32 %v227_v24, %v163_v23  ;;  %v261_v23 = vld [vmem:[#allocation3 + $0x3d8] sm:$0xff] }
  0x5d   :  { %v309_v36 = vadd.f32 %v245_v26, %v181_v25  ;;  %v165_v24 = vld [vmem:[#allocation3 + $0x1d0] sm:$0xff] }
  0x62   :  { %695 = vadd.xlane.f32.xlu1 %v318_v32 }
  0x63   :  { %605 = vadd.xlane.f32.xlu2 %v273_v33 }
  0x64   :  { %667 = vadd.xlane.f32.xlu0 %v304_v34 }
  0x6a   :  { %669 = vadd.xlane.f32.xlu1 %v305_v41 }
  0x6b   :  { %697 = vadd.xlane.f32.xlu2 %v319_v42 }
  0x6c   :  { %633 = vadd.xlane.f32.xlu0 %v287_v43 }
  0x72   :  { %635 = vadd.xlane.f32.xlu1 %v288_v50  ;;  %v195_v50 = vld [vmem:[#allocation3 + $0x3b0] sm:$0xff] }
  0x73   :  { %671 = vadd.xlane.f32.xlu2 %v306_v51  ;;  %v259_v51 = vld [vmem:[#allocation3 + $0x3b8] sm:$0xff] }
  0x74   :  { %607 = vadd.xlane.f32.xlu0 %v274_v52 }
  0x7a   :  { %609 = vadd.xlane.f32.xlu1 %v275_v59  ;;  %v292_v59 = vadd.f32 %v228_v49, %v164_v48 }
  0x7b   :  { %637 = vadd.xlane.f32.xlu2 %v289_v60  ;;  %v323_v60 = vadd.f32 %v259_v51, %v195_v50 }
  0x7c   :  { %699 = vadd.xlane.f32.xlu0 %v320_v61 }
  0x82   :  { %701 = vadd.xlane.f32.xlu1 %v321_v4  ;;  %v246_v4 = vld [vmem:[#allocation3 + $0x2e8] sm:$0xff] }
  0x83   :  { %611 = vadd.xlane.f32.xlu2 %v276_v5  ;;  %v310_v13 = vadd.f32 %v246_v4, %v182_v3 }
  0x84   :  { %673 = vadd.xlane.f32.xlu0 %v307_v6 }
  0x85   :  { %v652_v14 = vpop.xlane.xlu1 %651 }
  0x86   :  { %v592_v15 = vpop.xlane.xlu2 %591  ;;  %v909_v27 = vperm.slane %v652_v14, %v1235_v20 }
  0x87   :  { %v588_v16 = vpop.xlane.xlu0 %587  ;;  %v823_v31 = vperm.slane %v592_v15, %v1238_v21 }
  0x88   :  { %v817_v37 = vperm.slane %v588_v16, %v1235_v20  ;;  %v1267_v16 = vadd.s32 4294967264, %v1235_v20 }
  0x8a   :  { %675 = vadd.xlane.f32.xlu1 %v308_v17  ;;  %v183_v17 = vld [vmem:[#allocation3 + $0x2f0] sm:$0xff] }
  0x8b   :  { %703 = vadd.xlane.f32.xlu2 %v322_v18  ;;  %v247_v18 = vld [vmem:[#allocation3 + $0x2f8] sm:$0xff] }
  0x8c   :  { %639 = vadd.xlane.f32.xlu0 %v290_v19  ;;  %v197_v19 = vld [vmem:[#allocation3 + $0x3d0] sm:$0xff]  ;;  %v311_v29 = vadd.f32 %v247_v18, %v183_v17 }
  0x8d   :  { %v654_v30 = vpop.xlane.xlu1 %653 }
  0x8e   :  { %v910_v32 = vperm.slane %v654_v30, %v1241_v22  ;;  %v656_v33 = vpop.xlane.xlu2 %655 }
  0x8f   :  { %v590_v34 = vpop.xlane.xlu0 %589  ;;  %v912_v38 = vperm.slane %v656_v33, %v1238_v21 }
  0x90   :  { %v819_v39 = vperm.slane %v590_v34, %v1241_v22  ;;  %v911_v41 = vsel %vm820_vm0, %v910_v32, %v909_v27  ;;  %v325_v32 = vadd.f32 %v261_v23, %v197_v19 }
  0x91   :  { %v913_v42 = vsel %vm824_vm1, %v912_v38, %v911_v41  ;;  %v198_v38 = vld [vmem:[#allocation3 + $0x3e0] sm:$0xff]  ;;  %v230_v41 = vld [vmem:[#allocation3 + $0x1e8] sm:$0xff] }
  0x92   :  { %v821_v43 = vsel %vm820_vm0, %v819_v39, %v817_v37  ;;  %641 = vadd.xlane.f32.xlu1 %v291_v35  ;;  %v1276_v37 = vadd.s32 4294967256, %v1235_v20  ;;  %v262_v39 = vld [vmem:[#allocation3 + $0x3e8] sm:$0xff] }
  0x93   :  { %v825_v44 = vsel %vm824_vm1, %v823_v31, %v821_v43  ;;  %677 = vadd.xlane.f32.xlu2 %v309_v36  ;;  %v231_v43 = vld [vmem:[#allocation3 + $0x1f8] sm:$0xff]  ;;  %v326_v49 = vadd.f32 %v262_v39, %v198_v38 }
  0x94   :  { %613 = vadd.xlane.f32.xlu0 %v277_v40  ;;  %v166_v40 = vld [vmem:[#allocation3 + $0x1e0] sm:$0xff] }
  0x95   :  { %v620_v52 = vpop.xlane.xlu1 %619 }
  0x96   :  { %v878_v53 = vperm.slane %v620_v52, %v1235_v20  ;;  %v622_v54 = vpop.xlane.xlu2 %621  ;;  %v294_v52 = vadd.f32 %v230_v41, %v166_v40 }
  0x97   :  { %v594_v55 = vpop.xlane.xlu0 %593  ;;  %v879_v57 = vperm.slane %v622_v54, %v1241_v22 }
  0x98   :  { %v827_v58 = vperm.slane %v594_v55, %v1254_v45 }
  0x99   :  { %v880_v61 = vsel %vm820_vm0, %v879_v57, %v878_v53  ;;  %v838_v57 = vadd.s32 4294967248, %v1235_v20 }
  0x9a   :  { %v829_v62 = vsel %vm828_vm2, %v827_v58, %v825_v44  ;;  %615 = vadd.xlane.f32.xlu1 %v278_v56  ;;  %v199_v58 = vld [vmem:[#allocation3 + $0x3f0] sm:$0xff] }
  0x9b   :  { %643 = vadd.xlane.f32.xlu2 %v292_v59  ;;  %v263_v59 = vld [vmem:[#allocation3 + $0x3f8] sm:$0xff] }
  0x9c   :  { %705 = vadd.xlane.f32.xlu0 %v323_v60  ;;  %v327_v1 = vadd.f32 %v263_v59, %v199_v58  ;;  %v727_v58 = vld [vmem:[#allocation6 + $0x60] sm:$0xff]  ;;  %v726_v59 = vld [vmem:[#allocation6 + $0x58] sm:$0xff] }
  0x9d   :  { %v684_v5 = vpop.xlane.xlu1 %683 }
  0x9e   :  { %v940_v6 = vperm.slane %v684_v5, %v1235_v20  ;;  %v686_v7 = vpop.xlane.xlu2 %685 }
  0x9f   :  { %v658_v8 = vpop.xlane.xlu0 %657  ;;  %v941_v10 = vperm.slane %v686_v7, %v1241_v22  ;;  %v229_v22 = vld [vmem:[#allocation3 + $0x1d8] sm:$0xff] }
  0xa0   :  { %v914_v11 = vperm.slane %v658_v8, %v1254_v45  ;;  %v293_v33 = vadd.f32 %v229_v22, %v165_v24 }
  0xa1   :  { %v942_v14 = vsel %vm820_vm0, %v941_v10, %v940_v6 }
  0xa2   :  { %v915_v15 = vsel %vm828_vm2, %v914_v11, %v913_v42  ;;  %707 = vadd.xlane.f32.xlu1 %v324_v9  ;;  %v167_v42 = vld [vmem:[#allocation3 + $0x1f0] sm:$0xff] }
  0xa3   :  { %617 = vadd.xlane.f32.xlu2 %v279_v12  ;;  %v295_v53 = vadd.f32 %v231_v43, %v167_v42 }
  0xa4   :  { %679 = vadd.xlane.f32.xlu0 %v310_v13  ;;  %v842_v13 = vadd.s32 4294967240, %v1235_v20 }
  0xa5   :  { %v624_v25 = vpop.xlane.xlu1 %623 }
  0xa6   :  { %v881_v26 = vperm.slane %v624_v25, %v1238_v21  ;;  %v660_v27 = vpop.xlane.xlu2 %659  ;;  %v1301_v25 = vadd.s32 4294967232, %v1235_v20 }
  0xa7   :  { %v596_v28 = vpop.xlane.xlu0 %595  ;;  %v916_v30 = vperm.slane %v660_v27, %v1267_v16 }
  0xa8   :  { %v831_v31 = vperm.slane %v596_v28, %v1267_v16  ;;  %v882_v34 = vsel %vm824_vm1, %v881_v26, %v880_v61 }
  0xa9   :  { %v917_v35 = vsel %vm832_vm3, %v916_v30, %v915_v15 }
  0xaa   :  { %v833_v36 = vsel %vm832_vm3, %v831_v31, %v829_v62  ;;  %681 = vadd.xlane.f32.xlu1 %v311_v29 }
  0xab   :  { %709 = vadd.xlane.f32.xlu2 %v325_v32 }
  0xac   :  { %645 = vadd.xlane.f32.xlu0 %v293_v33 }
  0xad   :  { %v598_v44 = vpop.xlane.xlu1 %597 }
  0xae   :  { %v835_v46 = vperm.slane %v598_v44, %v1276_v37  ;;  %v626_v47 = vpop.xlane.xlu2 %625 }
  0xaf   :  { %v688_v48 = vpop.xlane.xlu0 %687  ;;  %v883_v50 = vperm.slane %v626_v47, %v1254_v45 }
  0xb0   :  { %v943_v51 = vperm.slane %v688_v48, %v1238_v21  ;;  %v837_v54 = vsel %vm836_vm4, %v835_v46, %v833_v36 }
  0xb1   :  { %v884_v55 = vsel %vm828_vm2, %v883_v50, %v882_v34  ;;  %v730_v50 = vld [vmem:[#allocation6 + $0x78] sm:$0xff] }
  0xb2   :  { %v944_v56 = vsel %vm824_vm1, %v943_v51, %v942_v14  ;;  %711 = vadd.xlane.f32.xlu1 %v326_v49  ;;  %v729_v51 = vld [vmem:[#allocation6 + $0x70] sm:$0xff]  ;;  %976 = vmatpush.msra.mxu0 %v730_v50 }
  0xb3   :  { %649 = vadd.xlane.f32.xlu2 %v295_v53 }
  0xb4   :  { %647 = vadd.xlane.f32.xlu0 %v294_v52  ;;  %977 = vmatpush.msra.mxu0 %v729_v51  ;;  %v1373_v51 = vadd.s32 4294967200, %v1235_v20 }
  0xb5   :  { %v690_v60 = vpop.xlane.xlu1 %689 }
  0xb6   :  { %v945_v61 = vperm.slane %v690_v60, %v1254_v45  ;;  %v600_v21 = vpop.xlane.xlu2 %599  ;;  %v725_v60 = vld [vmem:[#allocation6 + $0x50] sm:$0xff] }
  0xb7   :  { %v662_v62 = vpop.xlane.xlu0 %661  ;;  %v839_v63 = vperm.slane %v600_v21, %v838_v57 }
  0xb8   :  { %v918_v0 = vperm.slane %v662_v62, %v1276_v37  ;;  %v946_v2 = vsel %vm828_vm2, %v945_v61, %v944_v56  ;;  %v728_v56 = vld [vmem:[#allocation6 + $0x68] sm:$0xff] }
  0xb9   :  { %v841_v3 = vsel %vm840_vm5, %v839_v63, %v837_v54  ;;  %978 = vmatpush.msra.mxu0 %v728_v56  ;;  %v724_v63 = vld [vmem:[#allocation6 + $0x48] sm:$0xff] }
  0xba   :  { %v919_v4 = vsel %vm836_vm4, %v918_v0, %v917_v35  ;;  %v723_v0 = vld [vmem:[#allocation6 + $0x40] sm:$0xff] }
  0xbb   :  { %979 = vmatpush.msra.mxu0 %v727_v58  ;;  %v1380_v58 = vadd.s32 4294967192, %v1235_v20 }
  0xbc   :  { %713 = vadd.xlane.f32.xlu0 %v327_v1  ;;  %v722_v1 = vld [vmem:[#allocation6 + $0x38] sm:$0xff] }
  0xbd   :  { %v664_v5 = vpop.xlane.xlu1 %663  ;;  %980 = vmatpush.msra.mxu0 %v726_v59 }
  0xbe   :  { %v920_v6 = vperm.slane %v664_v5, %v838_v57  ;;  %v692_v7 = vpop.xlane.xlu2 %691 }
  0xbf   :  { %v628_v8 = vpop.xlane.xlu0 %627  ;;  %v947_v45 = vperm.slane %v692_v7, %v1267_v16  ;;  %981 = vmatpush.msra.mxu0 %v725_v60 }
  0xc0   :  { %v885_v9 = vperm.slane %v628_v8, %v1267_v16  ;;  %v921_v10 = vsel %vm840_vm5, %v920_v6, %v919_v4  ;;  %v721_v4 = vld [vmem:[#allocation6 + $0x30] sm:$0xff]  ;;  %v720_v8 = vld [vmem:[#allocation6 + $0x28] sm:$0xff] }
  0xc1   :  { %v948_v11 = vsel %vm832_vm3, %v947_v45, %v946_v2  ;;  %982 = vmatpush.msra.mxu0 %v724_v63  ;;  %v746_v2 = vld [vmem:[#allocation6 + $0xf8] sm:$0xff]  ;;  %v744_v45 = vld [vmem:[#allocation6 + $0xe8] sm:$0xff] }
  0xc2   :  { %v886_v12 = vsel %vm832_vm3, %v885_v9, %v884_v55  ;;  %996 = vmatpush.msra.mxu1 %v746_v2  ;;  %v719_v9 = vld [vmem:[#allocation6 + $0x20] sm:$0xff] }
  0xc3   :  { %983 = vmatpush.msra.mxu0 %v723_v0  ;;  %v1387_v0 = vadd.s32 4294967184, %v1235_v20 }
  0xc5   :  { %v630_v14 = vpop.xlane.xlu1 %629  ;;  %984 = vmatpush.msra.mxu0 %v722_v1  ;;  %v1029_v1 = vld [vmem:[#allocation8 + $0x60] sm:$0xff] }
  0xc6   :  { %v887_v15 = vperm.slane %v630_v14, %v1276_v37  ;;  %v666_v17 = vpop.xlane.xlu2 %665  ;;  %v741_v14 = vld [vmem:[#allocation6 + $0xd0] sm:$0xff] }
  0xc7   :  { %v602_v18 = vpop.xlane.xlu0 %601  ;;  %v922_v19 = vperm.slane %v666_v17, %v842_v13  ;;  %985 = vmatpush.msra.mxu0 %v721_v4 }
  0xc8   :  { %v843_v23 = vperm.slane %v602_v18, %v842_v13  ;;  %v888_v24 = vsel %vm836_vm4, %v887_v15, %v886_v12  ;;  %v742_v12 = vld [vmem:[#allocation6 + $0xd8] sm:$0xff] }
  0xc9   :  { %v923_v16 = vsel %vm844_vm6, %v922_v19, %v921_v10  ;;  %986 = vmatpush.msra.mxu0 %v720_v8  ;;  %v743_v10 = vld [vmem:[#allocation6 + $0xe0] sm:$0xff]  ;;  %v716_v19 = vld [vmem:[#allocation6 + $0x8] sm:$0xff]  ;;  %v1028_v8 = vld [vmem:[#allocation8 + $0x58] sm:$0xff] }
  0xca   :  { %v845_v22 = vsel %vm844_vm6, %v843_v23, %v841_v3  ;;  %v745_v3 = vld [vmem:[#allocation6 + $0xf0] sm:$0xff]  ;;  %v740_v23 = vld [vmem:[#allocation6 + $0xc8] sm:$0xff] }
  0xcb   :  { %997 = vmatpush.msra.mxu1 %v745_v3  ;;  %987 = vmatpush.msra.mxu0 %v719_v9  ;;  %v1394_v3 = vadd.s32 4294967176, %v1235_v20 }
  0xcd   :  { %v604_v26 = vpop.xlane.xlu1 %603  ;;  %998 = vmatpush.msra.mxu1 %v744_v45 }
  0xce   :  { %v847_v27 = vperm.slane %v604_v26, %v1301_v25  ;;  %v632_v28 = vpop.xlane.xlu2 %631  ;;  %v737_v26 = vld [vmem:[#allocation6 + $0xb0] sm:$0xff] }
  0xcf   :  { %v694_v29 = vpop.xlane.xlu0 %693  ;;  %v889_v30 = vperm.slane %v632_v28, %v838_v57  ;;  %999 = vmatpush.msra.mxu1 %v743_v10 }
  0xd0   :  { %v949_v31 = vperm.slane %v694_v29, %v1276_v37  ;;  %v1306_v32 = vsel %vm848_vm7, %v847_v27, %v845_v22  ;;  %v738_v22 = vld [vmem:[#allocation6 + $0xb8] sm:$0xff] }
  0xd1   :  { %v890_v33 = vsel %vm840_vm5, %v889_v30, %v888_v24  ;;  %1000 = vmatpush.msra.mxu1 %v742_v12  ;;  %v715_v24 = vld [vmem:[#allocation6] sm:$0xff]  ;;  %v736_v30 = vld [vmem:[#allocation6 + $0xa8] sm:$0xff] }
  0xd2   :  { %v950_v34 = vsel %vm836_vm4, %v949_v31, %v948_v11  ;;  %v718_v11 = vld [vmem:[#allocation6 + $0x18] sm:$0xff]  ;;  %v735_v31 = vld [vmem:[#allocation6 + $0xa0] sm:$0xff] }
  0xd3   :  { %988 = vmatpush.msra.mxu0 %v718_v11  ;;  %1001 = vmatpush.msra.mxu1 %v741_v14 }
  0xd5   :  { %v696_v35 = vpop.xlane.xlu1 %695  ;;  %1002 = vmatpush.msra.mxu1 %v740_v23 }
  0xd6   :  { %v951_v36 = vperm.slane %v696_v35, %v838_v57  ;;  %v1310_v38 = vpop.xlane.xlu2 %605 }
  0xd7   :  { %v668_v39 = vpop.xlane.xlu0 %667 }
  0xd8   :  { %v924_v40 = vperm.slane %v668_v39, %v1301_v25  ;;  %v952_v41 = vsel %vm840_vm5, %v951_v36, %v950_v34  ;;  %v733_v34 = vld [vmem:[#allocation6 + $0x90] sm:$0xff] }
  0xda   :  { %v1315_v42 = vsel %vm848_vm7, %v924_v40, %v923_v16  ;;  %v739_v16 = vld [vmem:[#allocation6 + $0xc0] sm:$0xff]  ;;  %v732_v40 = vld [vmem:[#allocation6 + $0x88] sm:$0xff] }
  0xdb   :  { %1003 = vmatpush.msra.mxu1 %v739_v16 }
  0xdd   :  { %v1317_v37 = vpop.xlane.xlu1 %669  ;;  %1004 = vmatpush.msra.mxu1 %v738_v22 }
  0xde   :  { %v698_v43 = vpop.xlane.xlu2 %697 }
  0xdf   :  { %v634_v44 = vpop.xlane.xlu0 %633  ;;  %v953_v46 = vperm.slane %v698_v43, %v842_v13  ;;  %1005 = vmatpush.msra.mxu1 %v737_v26  ;;  %v1362_v43 = vadd.s32 4294967224, %v1235_v20 }
  0xe0   :  { %v891_v47 = vperm.slane %v634_v44, %v842_v13  ;;  %v717_v13 = vld [vmem:[#allocation6 + $0x10] sm:$0xff]  ;;  %v1365_v44 = vadd.s32 4294967216, %v1235_v20 }
  0xe1   :  { %v1320_v48 = vsel %vm844_vm6, %v953_v46, %v952_v41  ;;  %989 = vmatpush.msra.mxu0 %v717_v13  ;;  %1006 = vmatpush.msra.mxu1 %v736_v30  ;;  %v731_v41 = vld [vmem:[#allocation6 + $0x80] sm:$0xff]  ;;  %v1032_v46 = vld [vmem:[#allocation8 + $0x78] sm:$0xff]  ;;  %v851_v50 = vperm.slane %v1310_v38, %v1362_v43  ;;  %v926_v56 = vperm.slane %v1317_v37, %v1362_v43 }
  0xe2   :  { %v892_v49 = vsel %vm844_vm6, %v891_v47, %v890_v33  ;;  %v734_v33 = vld [vmem:[#allocation6 + $0x98] sm:$0xff]  ;;  %v1031_v47 = vld [vmem:[#allocation8 + $0x70] sm:$0xff]  ;;  %1037 = vmatpush.msra.mxu2 %v1032_v46 }
  0xe3   :  { %990 = vmatpush.msra.mxu0 %v716_v19  ;;  %1007 = vmatpush.msra.mxu1 %v735_v31 }
  0xe4   :  { %1038 = vmatpush.msra.mxu2 %v1031_v47 }
  0xe5   :  { %v636_v52 = vpop.xlane.xlu1 %635  ;;  %991 = vmatpush.msra.mxu0 %v715_v24  ;;  %1008 = vmatpush.msra.mxu1 %v734_v33 }
  0xe6   :  { %v893_v53 = vperm.slane %v636_v52, %v1301_v25  ;;  %v1324_v54 = vpop.xlane.xlu2 %671 }
  0xe7   :  { %v1326_v55 = vpop.xlane.xlu0 %607  ;;  %1009 = vmatpush.msra.mxu1 %v733_v34  ;;  %v928_v38 = vperm.slane %v1324_v54, %v1365_v44  ;;  %v853_v54 = vsel %vm852_vm8, %v851_v50, %v1306_v32 }
  0xe8   :  { %v1329_v57 = vsel %vm848_vm7, %v893_v53, %v892_v49  ;;  %v1368_v49 = vadd.s32 4294967208, %v1235_v20  ;;  %v1030_v53 = vld [vmem:[#allocation8 + $0x68] sm:$0xff]  ;;  %v855_v63 = vperm.slane %v1326_v55, %v1365_v44 }
  0xe9   :  { %1010 = vmatpush.msra.mxu1 %v732_v40  ;;  %1039 = vmatpush.msra.mxu2 %v1030_v53 }
  0xea   :  { %v857_v45 = vsel %vm856_vm9, %v855_v63, %v853_v54  ;;  %v1026_v54 = vld [vmem:[#allocation8 + $0x48] sm:$0xff] }
  0xeb   :  { %1011 = vmatpush.msra.mxu1 %v731_v41  ;;  %1040 = vmatpush.msra.mxu2 %v1029_v1 }
  0xed   :  { %v1331_v61 = vpop.xlane.xlu1 %609  ;;  %1041 = vmatpush.msra.mxu2 %v1028_v8  ;;  %v1023_v8 = vld [vmem:[#allocation8 + $0x30] sm:$0xff] }
  0xee   :  { %v1333_v21 = vpop.xlane.xlu2 %637  ;;  %v859_v37 = vperm.slane %v1331_v61, %v1368_v49  ;;  %v927_v61 = vsel %vm852_vm8, %v926_v56, %v1315_v42 }
  0xef   :  { %v1335_v62 = vpop.xlane.xlu0 %699  ;;  %v929_v32 = vsel %vm856_vm9, %v928_v38, %v927_v61  ;;  %v895_v31 = vperm.slane %v1333_v21, %v1362_v43  ;;  %v1022_v61 = vld [vmem:[#allocation8 + $0x28] sm:$0xff] }
  0xf0   :  { %v861_v10 = vsel %vm860_vm10, %v859_v37, %v857_v45  ;;  %v955_v33 = vperm.slane %v1335_v62, %v1301_v25  ;;  %v1017_v45 = vld [vmem:[#allocation8] sm:$0xff] }
  0xf1   :  { %v896_v21 = vsel %vm852_vm8, %v895_v31, %v1329_v57 }
  0xf5   :  { %v1337_v5 = vpop.xlane.xlu1 %701 }
  0xf6   :  { %v1339_v6 = vpop.xlane.xlu2 %611  ;;  %v957_v40 = vperm.slane %v1337_v5, %v1362_v43  ;;  %v956_v5 = vsel %vm848_vm7, %v955_v33, %v1320_v48 }
  0xf7   :  { %v1341_v7 = vpop.xlane.xlu0 %673  ;;  %v863_v55 = vperm.slane %v1339_v6, %v1373_v51 }
  0xf8   :  { %v930_v2 = vperm.slane %v1341_v7, %v1368_v49 }
  0xf9   :  { %v865_v12 = vsel %vm864_vm11, %v863_v55, %v861_v10  ;;  %v1025_v55 = vld [vmem:[#allocation8 + $0x40] sm:$0xff] }
  0xfa   :  { %v931_v42 = vsel %vm860_vm10, %v930_v2, %v929_v32  ;;  %v1027_v2 = vld [vmem:[#allocation8 + $0x50] sm:$0xff]  ;;  %v1018_v32 = vld [vmem:[#allocation8 + $0x8] sm:$0xff] }
  0xfb   :  { %1042 = vmatpush.msra.mxu2 %v1027_v2 }
  0xfd   :  { %v1343_v15 = vpop.xlane.xlu1 %675  ;;  %1043 = vmatpush.msra.mxu2 %v1026_v54 }
  0xfe   :  { %v1345_v17 = vpop.xlane.xlu2 %703  ;;  %v932_v4 = vperm.slane %v1343_v15, %v1373_v51 }
  0xff   :  { %v1347_v18 = vpop.xlane.xlu0 %639  ;;  %v959_v46 = vperm.slane %v1345_v17, %v1365_v44  ;;  %1044 = vmatpush.msra.mxu2 %v1025_v55 }
 0x100   :  { %v933_v13 = vsel %vm864_vm11, %v932_v4, %v931_v42  ;;  %v897_v34 = vperm.slane %v1347_v18, %v1365_v44  ;;  %v958_v44 = vsel %vm852_vm8, %v957_v40, %v956_v5  ;;  %v1024_v4 = vld [vmem:[#allocation8 + $0x38] sm:$0xff] }
 0x101   :  { %1045 = vmatpush.msra.mxu2 %v1024_v4 }
 0x103   :  { %1046 = vmatpush.msra.mxu2 %v1023_v8 }
 0x105   :  { %v1349_v27 = vpop.xlane.xlu1 %641  ;;  %1047 = vmatpush.msra.mxu2 %v1022_v61 }
 0x106   :  { %v1351_v28 = vpop.xlane.xlu2 %677  ;;  %v899_v41 = vperm.slane %v1349_v27, %v1368_v49  ;;  %v898_v27 = vsel %vm856_vm9, %v897_v34, %v896_v21 }
 0x107   :  { %v1353_v29 = vpop.xlane.xlu0 %613  ;;  %v934_v20 = vperm.slane %v1351_v28, %v1380_v58 }
 0x108   :  { %v867_v7 = vperm.slane %v1353_v29, %v1380_v58  ;;  %v900_v57 = vsel %vm860_vm10, %v899_v41, %v898_v27 }
 0x109   :  { %v935_v15 = vsel %vm868_vm12, %v934_v20, %v933_v13  ;;  %v1020_v20 = vld [vmem:[#allocation8 + $0x18] sm:$0xff]  ;;  %v1085_v13 = vld [vmem:[%s1481_s4] ss:$0 sm:$0xff] }
 0x10a   :  { %v869_v19 = vsel %vm868_vm12, %v867_v7, %v865_v12  ;;  %v1019_v7 = vld [vmem:[#allocation8 + $0x10] sm:$0xff] }
 0x10d   :  { %v1355_v35 = vpop.xlane.xlu1 %615 }
 0x10e   :  { %v1357_v36 = vpop.xlane.xlu2 %643  ;;  %v871_v6 = vperm.slane %v1355_v35, %v1387_v0 }
 0x10f   :  { %v1359_v39 = vpop.xlane.xlu0 %705  ;;  %v901_v47 = vperm.slane %v1357_v36, %v1373_v51 }
 0x110   :  { %v873_v16 = vsel %vm872_vm13, %v871_v6, %v869_v19  ;;  %v961_v25 = vperm.slane %v1359_v39, %v1368_v49  ;;  %v960_v49 = vsel %vm856_vm9, %v959_v46, %v958_v44  ;;  %v1084_v6 = vld [vmem:[%s1479_s2] ss:$0 sm:$0xff] }
 0x111   :  { %v902_v50 = vsel %vm864_vm11, %v901_v47, %v900_v57 }
 0x112   :  { %v962_v53 = vsel %vm860_vm10, %v961_v25, %v960_v49 }
 0x115   :  { %v1375_v52 = vpop.xlane.xlu1 %707 }
 0x116   :  { %v618_v59 = vpop.xlane.xlu2 %617  ;;  %v963_v17 = vperm.slane %v1375_v52, %v1373_v51 }
 0x117   :  { %v680_v60 = vpop.xlane.xlu0 %679  ;;  %v875_v11 = vperm.slane %v618_v59, %v1394_v3 }
 0x118   :  { %v936_v9 = vperm.slane %v680_v60, %v1387_v0  ;;  %v964_v52 = vsel %vm864_vm11, %v963_v17, %v962_v53 }
 0x119   :  { %v877_v28 = vsel %vm876_vm14, %v875_v11, %v873_v16 }
 0x11a   :  { %v937_v22 = vsel %vm872_vm13, %v936_v9, %v935_v15 }
 0x11d   :  { %v682_v14 = vpop.xlane.xlu1 %681 }
 0x11e   :  { %v938_v23 = vperm.slane %v682_v14, %v1394_v3  ;;  %v710_v26 = vpop.xlane.xlu2 %709 }
 0x11f   :  { %v646_v24 = vpop.xlane.xlu0 %645  ;;  %v965_v39 = vperm.slane %v710_v26, %v1380_v58 }
 0x120   :  { %v939_v29 = vsel %vm876_vm14, %v938_v23, %v937_v22  ;;  %v903_v62 = vperm.slane %v646_v24, %v1380_v58 }
 0x121   :  { %v972_v30 = vsel %vm971_vm15, %v939_v29, %v877_v28  ;;  %v966_v38 = vsel %vm868_vm12, %v965_v39, %v964_v52 }
 0x122   :  { %992 = vmatmul.f32.vlgmr.msra.gmra.mxu0 %v972_v30  ;;  %v904_v56 = vsel %vm868_vm12, %v903_v62, %v902_v50 }
 0x125   :  { %v712_v18 = vpop.xlane.xlu1 %711 }
 0x126   :  { %v650_v36 = vpop.xlane.xlu2 %649  ;;  %v967_v48 = vperm.slane %v712_v18, %v1387_v0 }
 0x127   :  { %v648_v35 = vpop.xlane.xlu0 %647  ;;  %v907_v51 = vperm.slane %v650_v36, %v1394_v3 }
 0x128   :  { %v905_v43 = vperm.slane %v648_v35, %v1387_v0  ;;  %v968_v63 = vsel %vm872_vm13, %v967_v48, %v966_v38 }
 0x12a   :  { %v906_v60 = vsel %vm872_vm13, %v905_v43, %v904_v56 }
 0x12b   :  { %v908_v1 = vsel %vm876_vm14, %v907_v51, %v906_v60 }
 0x12f   :  { %v714_v59 = vpop.xlane.xlu0 %713 }
 0x130   :  { %v969_v58 = vperm.slane %v714_v59, %v1394_v3  ;;  %v1021_v3 = vld [vmem:[#allocation8 + $0x20] sm:$0xff] }
 0x131   :  { %1048 = vmatpush.msra.mxu2 %v1021_v3 }
 0x132   :  { %v970_v0 = vsel %vm876_vm14, %v969_v58, %v968_v63 }
 0x133   :  { %v973_v37 = vsel %vm971_vm15, %v970_v0, %v908_v1  ;;  %1049 = vmatpush.msra.mxu2 %v1020_v20 }
 0x134   :  { %1012 = vmatmul.f32.vlgmr.msra.gmra.mxu1 %v973_v37 }
 0x135   :  { %1050 = vmatpush.msra.mxu2 %v1019_v7 }
 0x137   :  { %1051 = vmatpush.msra.mxu2 %v1018_v32 }
 0x139   :  { %1052 = vmatpush.msra.mxu2 %v1017_v45 }
 0x19f   :  { %v993_v9 = vpop.f32.mrf.mxu0 }
 0x1a0   :  { %v994_v10 = vadd.f32 %v1084_v6, %v993_v9 }
 0x1b1   :  { %v1013_v42 = vpop.f32.mrf.mxu1 }
 0x1b2   :  { %v1014_v11 = vadd.f32 %v1013_v42, %v994_v10 }
 0x1b4   :  { %v1016_v12 = vmax.f32 %v1014_v11, 0.0 }
 0x1b6   :  { %1053 = vmatmul.f32.vlgmr.msra.gmra.mxu2 %v1016_v12 }
 0x239   :  { %v1054_v14 = vpop.f32.mrf.mxu2 }
 0x23a   :  { %v1055_v15 = vadd.f32 %v1085_v13, %v1054_v14 }
 0x23c   :  { %1057 = vst [vmem:[#allocation9] sm:$0x3] %v1055_v15 }
 0x23d   :  { %1068 = dma.vmem_to_hbm [thread:$0]  %s1064_s14, 32, %s1066_s17, [#allocation5]  }
 0x23e   :  { %1186 = dma.done.wait [#allocation5], 32  }
 0x23f   :  { %1187 = vsyncadd [#allocation5], 4294967264 }
 0x240   :  { %1073 = vsyncpa [#allocation4], 1 }
 0x241   :  { %1074 = vsyncpa [#allocation7], 1 }
 0x242   :  { %1075 = vsyncpa [#allocation5], 1 }

</bundles_post_ra>
